<compile_context>
chip_gen: v5e
topology: v5e:2x2
jax: 0.10.0
libtpu: 0.0.40
codegen_flags: <defaults>
</compile_context>

<pallas_src>
import functools

import jax
import jax.numpy as jnp
import numpy as np
from jax.experimental import pallas as pl
from jax.experimental.pallas import tpu as pltpu

GAMMA = 1.4
R_GAS = 287.058

_MAX_TB = 16              # cap on batch packing (bounds kernel unroll size)


# ----------------------- de-duplicated AUSM helpers ---------------------------

def _m_pm(x, lt1):
    """(M_plus(x), M_minus(x)) sharing the |x|<=1 mask."""
    xp = jnp.where(lt1, 0.25 * jnp.square(x + 1.0), jnp.where(x > 0.0, x, 0.0))
    xm = jnp.where(lt1, -0.25 * jnp.square(x - 1.0), jnp.where(x < 0.0, x, 0.0))
    return xp, xm


def _p_pm(P, M, lt1):
    """(P_plus(P,M), P_minus(P,M)) sharing the |M|<=1 mask."""
    pp = jnp.where(lt1, 0.5 * P * (1.0 + M), jnp.where(M > 1.0, P, 0.0))
    pm = jnp.where(lt1, 0.5 * P * (1.0 - M), jnp.where(M < -1.0, -P, 0.0))
    return pp, pm


def _residual_2d(Rho, U, V, P, T, M, W):
    """Per-point eq1 - eq2 + eq3 - eq4 on a (TH, W) f32 tile (12 XLU rolls)."""
    roll_r = lambda t: pltpu.roll(t, 1, 1)        # torch.roll(t, +1, -1)
    roll_l = lambda t: pltpu.roll(t, W - 1, 1)    # torch.roll(t, -1, -1)

    aT = jnp.sqrt(jnp.abs(GAMMA * R_GAS * T))
    rho_a = Rho * aT
    Fu = rho_a * U
    Fv = rho_a * V

    # M / P terms: evaluate the elementwise pieces once, roll the results.
    lt1_M = jnp.abs(M) <= 1.0
    Mp, Mm = _m_pm(M, lt1_M)
    Pp, Pm = _p_pm(P, M, lt1_M)
    mR_M = Mp + roll_l(Mm)          # M_R(M) = M_plus(M) + M_minus(shift_L(M))
    mL_M = roll_r(Mp) + Mm          # M_L(M) = M_plus(shift_R(M)) + M_minus(M)
    pR = Pp + roll_l(Pm)            # P_R(P,M)
    pL = roll_r(Pp) + Pm            # P_L(P,M)

    def phi_pair(F):
        lt1_F = jnp.abs(F) <= 1.0
        Fp, Fm = _m_pm(F, lt1_F)
        mR_F = Fp + roll_l(Fm)      # M_R(F)
        mL_F = roll_r(Fp) + Fm      # M_L(F)
        F_l = roll_l(F)
        F_r = roll_r(F)
        phiR = jnp.where(mR_F > 0.0, F, jnp.where(mR_F < 0.0, F_l, 0.0))
        phiL = jnp.where(mL_F > 0.0, F, jnp.where(mL_F < 0.0, F_r, 0.0))
        return phiR, phiL

    phiR_u, phiL_u = phi_pair(Fu)
    phiR_v, phiL_v = phi_pair(Fv)

    # eq1 - eq2 + eq3 - eq4 with the shared M_R / M_L factors pulled out.
    return mR_M * (phiR_u + phiR_v) - mL_M * (phiL_u + phiL_v) + (pR - pL)


# ------------------------------- Pallas kernels --------------------------------

def _make_partial_fn(TB, TH, W):
    """Returns fn(x_ref) -> (8, W) f32 partial sums for a (TB, 6, TH, W) block."""

    def partial_fn(x_ref):
        acc = None
        for tb in range(TB):                      # static unroll (TB <= _MAX_TB)
            Rho = x_ref[tb, 0, :, :].astype(jnp.float32)
            U = x_ref[tb, 1, :, :].astype(jnp.float32)
            V = x_ref[tb, 2, :, :].astype(jnp.float32)
            P = x_ref[tb, 3, :, :].astype(jnp.float32)
            T = x_ref[tb, 4, :, :].astype(jnp.float32)
            M = x_ref[tb, 5, :, :].astype(jnp.float32)
            r = _residual_2d(Rho, U, V, P, T, M, W)
            acc = r if acc is None else acc + r

        if TH % 8 == 0:
            # Fold row groups with plain VALU vreg adds (no XLU reduce).
            part = acc[0:8, :]
            for g in range(1, TH // 8):
                part = part + acc[g * 8:(g + 1) * 8, :]
        else:
            # Rare fallback (H not a multiple of 8): one sublane reduce.
            s = jnp.sum(acc, axis=0, keepdims=True)              # (1, W)
            row = jax.lax.broadcasted_iota(jnp.int32, (8, W), 0)
            part = jnp.where(row == 0, jnp.broadcast_to(s, (8, W)), 0.0)
        return part

    return partial_fn


def _make_kernels(TB, TH, W):
    partial_fn = _make_partial_fn(TB, TH, W)

    def single_kernel(x_ref, o_ref):
        o_ref[0, 0, :, :] = partial_fn(x_ref)

    def diff_kernel(x_ref, g_ref, o_ref):
        # Fused ground path: partial(output) - partial(ground) in one pass.
        o_ref[0, 0, :, :] = partial_fn(x_ref) - partial_fn(g_ref)

    return single_kernel, diff_kernel


def _pick_tiles(B, H, W, itemsize, n_inputs, max_block_bytes):
    """Choose (TB, TH) so each grid step moves <= max_block_bytes of input."""
    bytes_per_row = 6 * W * itemsize * n_inputs
    slab = bytes_per_row * H
    if slab <= max_block_bytes:
        # Small spatial slab: pack batch elements to amortize per-step overhead.
        tb = 1
        for cand in range(min(B, _MAX_TB), 0, -1):
            if B % cand == 0 and cand * slab <= max_block_bytes:
                tb = cand
                break
        return tb, H
    # Large spatial slab: tile H (lane-only roll -> no halo needed).
    th = H
    if H % 8 == 0:
        best = 8
        for cand in range(8, H + 1, 8):
            if H % cand == 0 and cand * bytes_per_row <= max_block_bytes:
                best = cand
        th = best
    # TODO(synk): if H is not a multiple of 8 and the slab exceeds the budget we
    # fall back to a single full-H block (correct, but may need more VMEM).
    return 1, th


def _mom_partials_call(x, g, max_block_bytes):
    B, C, H, W = x.shape
    assert C == 6, "expected 6 channels (Rho, U, V, P, T, M)"
    n_in = 1 if g is None else 2
    itemsize = jnp.dtype(x.dtype).itemsize
    TB, TH = _pick_tiles(B, H, W, itemsize, n_in, max_block_bytes)
    num_b, num_h = B // TB, H // TH

    single_kernel, diff_kernel = _make_kernels(TB, TH, W)

    in_spec = pl.BlockSpec((TB, 6, TH, W), lambda b, h: (b, 0, h, 0))
    out_spec = pl.BlockSpec((1, 1, 8, W), lambda b, h: (b, h, 0, 0))
    out_shape = jax.ShapeDtypeStruct((num_b, num_h, 8, W), jnp.float32)
    cparams = pltpu.CompilerParams(
        dimension_semantics=("parallel", "parallel"),   # every block independent
        vmem_limit_bytes=32 * 1024 * 1024,
    )

    if g is None:
        return pl.pallas_call(
            single_kernel,
            out_shape=out_shape,
            grid_spec=pltpu.PrefetchScalarGridSpec(
                num_scalar_prefetch=0, grid=(num_b, num_h),
                in_specs=[in_spec], out_specs=out_spec),
            compiler_params=cparams,
        )(x)
    return pl.pallas_call(
        diff_kernel,
        out_shape=out_shape,
        grid_spec=pltpu.PrefetchScalarGridSpec(
            num_scalar_prefetch=0, grid=(num_b, num_h),
            in_specs=[in_spec, in_spec], out_specs=out_spec),
        compiler_params=cparams,
    )(x, g)


@functools.partial(jax.jit, static_argnames=("max_block_bytes",))
def _mom_loss_single_jit(output, max_block_bytes):
    return jnp.sum(_mom_partials_call(output, None, max_block_bytes))


@functools.partial(jax.jit, static_argnames=("max_block_bytes",))
def _mom_loss_diff_jit(output, ground, max_block_bytes):
    return jnp.sum(_mom_partials_call(output, ground, max_block_bytes))


def momentum_conservation_loss(output, ground=None, *,
                               max_block_bytes=6 * 1024 * 1024):
    """Equivalent of MomentumConservationLoss().forward(output, ground)."""
    # TODO(synk): wandb logging / pdb debug hooks in the PyTorch module are
    # host-side only and intentionally not reproduced.
    if ground is None:
        return _mom_loss_single_jit(output, max_block_bytes=max_block_bytes)
    return _mom_loss_diff_jit(output, ground, max_block_bytes=max_block_bytes)


# ------------------------------ pure-JAX reference -----------------------------

def _reference_loss(output, ground=None):
    """Straightforward (non-deduplicated) port of the PyTorch formulas."""

    def f_mom_sum(x):
        x = x.astype(jnp.float32)
        sR = lambda t: jnp.roll(t, 1, axis=-1)
        sL = lambda t: jnp.roll(t, -1, axis=-1)
        Rho, U, V, P, T, M = (x[:, i] for i in range(6))
        aT = jnp.sqrt(jnp.abs(GAMMA * R_GAS * T))
        Fu = Rho * aT * U
        Fv = Rho * aT * V

        def m_plus(m):
            return jnp.where(jnp.abs(m) <= 1.0, 0.25 * jnp.square(m + 1.0),
                             jnp.where(m > 0.0, m, 0.0))

        def m_minus(m):
            return jnp.where(jnp.abs(m) <= 1.0, -0.25 * jnp.square(m - 1.0),
                             jnp.where(m < 0.0, m, 0.0))

        def m_L(m):
            return m_plus(sR(m)) + m_minus(m)

        def m_R(m):
            return m_plus(m) + m_minus(sL(m))

        def p_plus(p, m):
            return jnp.where(jnp.abs(m) <= 1.0, 0.5 * p * (1.0 + m),
                             jnp.where(m > 1.0, p, 0.0))

        def p_minus(p, m):
            return jnp.where(jnp.abs(m) <= 1.0, 0.5 * p * (1.0 - m),
                             jnp.where(m < -1.0, -p, 0.0))

        def p_L(p, m):
            return p_plus(sR(p), sR(m)) + p_minus(p, m)

        def p_R(p, m):
            return p_plus(p, m) + p_minus(sL(p), sL(m))

        def phi_L(t):
            ml = m_L(t)
            return jnp.where(ml < 0.0, sR(t), 0.0) + jnp.where(ml > 0.0, t, 0.0)

        def phi_R(t):
            mr = m_R(t)
            return jnp.where(mr > 0.0, t, 0.0) + jnp.where(mr < 0.0, sL(t), 0.0)

        eq1 = m_R(M) * phi_R(Fu) + p_R(P, M)
        eq2 = m_L(M) * phi_L(Fu) + p_L(P, M)
        eq3 = m_R(M) * phi_R(Fv)
        eq4 = m_L(M) * phi_L(Fv)
        return jnp.sum(eq1 - eq2 + eq3 - eq4)

    r = f_mom_sum(output)
    if ground is not None:
        r = r - f_mom_sum(ground)
    return r


if __name__ == "__main__":
    key = jax.random.PRNGKey(0)
    k1, k2, k3, k4, k5 = jax.random.split(key, 5)

    # 1) / 2) small NCHW case (batch-packing path: TB=2, grid=(1,1)).
    B, C, H, W = 2, 6, 8, 128
    out1 = jax.random.normal(k1, (B, C, H, W), dtype=jnp.float32)
    gnd1 = jax.random.normal(k2, (B, C, H, W), dtype=jnp.float32)

    loss = momentum_conservation_loss(out1)
    jax.block_until_ready(loss)
    np.testing.assert_allclose(np.asarray(loss), np.asarray(_reference_loss(out1)),
                               rtol=1e-3, atol=1.0)

    loss_g = momentum_conservation_loss(out1, gnd1)
    jax.block_until_ready(loss_g)
    np.testing.assert_allclose(np.asarray(loss_g),
                               np.asarray(_reference_loss(out1, gnd1)),
                               rtol=1e-3, atol=1.0)

    # 3) larger spatial case with a small block budget to exercise the
    #    H-tiling path (TB=1, TH=16, W=256, grid=(2,2)).
    out3 = jax.random.normal(k3, (2, 6, 32, 256), dtype=jnp.float32)
    loss3 = momentum_conservation_loss(out3, max_block_bytes=128 * 1024)
    jax.block_until_ready(loss3)
    np.testing.assert_allclose(np.asarray(loss3),
                               np.asarray(_reference_loss(out3)),
                               rtol=1e-3, atol=1.0)

    # 4) bf16 inputs (native-dtype DMA, cast to f32 inside the kernel), fused
    #    ground path with TB=4.
    out4 = jax.random.normal(k4, (4, 6, 16, 128), dtype=jnp.bfloat16)
    gnd4 = jax.random.normal(k5, (4, 6, 16, 128), dtype=jnp.bfloat16)
    loss4 = momentum_conservation_loss(out4, gnd4)
    jax.block_until_ready(loss4)
    np.testing.assert_allclose(np.asarray(loss4),
                               np.asarray(_reference_loss(out4, gnd4)),
                               rtol=1e-3, atol=1.0)

    print("KERNEL_OK")
</pallas_src>

<mosaic_0001>
module attributes {stable_mosaic.version = 11 : i64} {
  func.func @single_kernel(%arg0: i32, %arg1: i32, %arg2: memref<2x6x8x128xf32, #tpu.memory_space<vmem>>, %arg3: memref<1x1x8x128xf32, #tpu.memory_space<vmem>>) attributes {dimension_semantics = [#tpu.dimension_semantics<parallel>, #tpu.dimension_semantics<parallel>], iteration_bounds = array<i64: 1, 1>, scalar_prefetch = 0 : i64, scratch_operands = 0 : i64, tpu.core_type = #tpu.core_type<tc>, window_params = [{transform_indices = @transform_0, window_bounds = array<i64: 2, 6, 8, 128>}, {transform_indices = @transform_1, window_bounds = array<i64: 1, 1, 8, 128>}]} {
    %c0 = arith.constant 0 : index
    %c0_0 = arith.constant 0 : index
    %c0_1 = arith.constant 0 : index
    %c0_2 = arith.constant 0 : index
    %0 = vector.load %arg2[%c0, %c0_0, %c0_1, %c0_2] : memref<2x6x8x128xf32, #tpu.memory_space<vmem>>, vector<1x1x8x128xf32>
    %1 = vector.shape_cast %0 : vector<1x1x8x128xf32> to vector<8x128xf32>
    %c0_3 = arith.constant 0 : index
    %c1 = arith.constant 1 : index
    %c0_4 = arith.constant 0 : index
    %c0_5 = arith.constant 0 : index
    %2 = vector.load %arg2[%c0_3, %c1, %c0_4, %c0_5] : memref<2x6x8x128xf32, #tpu.memory_space<vmem>>, vector<1x1x8x128xf32>
    %3 = vector.shape_cast %2 : vector<1x1x8x128xf32> to vector<8x128xf32>
    %c0_6 = arith.constant 0 : index
    %c2 = arith.constant 2 : index
    %c0_7 = arith.constant 0 : index
    %c0_8 = arith.constant 0 : index
    %4 = vector.load %arg2[%c0_6, %c2, %c0_7, %c0_8] : memref<2x6x8x128xf32, #tpu.memory_space<vmem>>, vector<1x1x8x128xf32>
    %5 = vector.shape_cast %4 : vector<1x1x8x128xf32> to vector<8x128xf32>
    %c0_9 = arith.constant 0 : index
    %c3 = arith.constant 3 : index
    %c0_10 = arith.constant 0 : index
    %c0_11 = arith.constant 0 : index
    %6 = vector.load %arg2[%c0_9, %c3, %c0_10, %c0_11] : memref<2x6x8x128xf32, #tpu.memory_space<vmem>>, vector<1x1x8x128xf32>
    %7 = vector.shape_cast %6 : vector<1x1x8x128xf32> to vector<8x128xf32>
    %c0_12 = arith.constant 0 : index
    %c4 = arith.constant 4 : index
    %c0_13 = arith.constant 0 : index
    %c0_14 = arith.constant 0 : index
    %8 = vector.load %arg2[%c0_12, %c4, %c0_13, %c0_14] : memref<2x6x8x128xf32, #tpu.memory_space<vmem>>, vector<1x1x8x128xf32>
    %9 = vector.shape_cast %8 : vector<1x1x8x128xf32> to vector<8x128xf32>
    %c0_15 = arith.constant 0 : index
    %c5 = arith.constant 5 : index
    %c0_16 = arith.constant 0 : index
    %c0_17 = arith.constant 0 : index
    %10 = vector.load %arg2[%c0_15, %c5, %c0_16, %c0_17] : memref<2x6x8x128xf32, #tpu.memory_space<vmem>>, vector<1x1x8x128xf32>
    %11 = vector.shape_cast %10 : vector<1x1x8x128xf32> to vector<8x128xf32>
    %cst = arith.constant 401.881195 : f32
    %12 = vector.broadcast %cst : f32 to vector<8x128xf32>
    %13 = arith.mulf %12, %9 : vector<8x128xf32>
    %14 = math.absf %13 : vector<8x128xf32>
    %15 = math.sqrt %14 : vector<8x128xf32>
    %16 = arith.mulf %1, %15 : vector<8x128xf32>
    %17 = arith.mulf %16, %3 : vector<8x128xf32>
    %18 = arith.mulf %16, %5 : vector<8x128xf32>
    %19 = math.absf %11 : vector<8x128xf32>
    %cst_18 = arith.constant 1.000000e+00 : f32
    %20 = vector.broadcast %cst_18 : f32 to vector<8x128xf32>
    %21 = arith.cmpf ole, %19, %20 : vector<8x128xf32>
    %cst_19 = arith.constant 1.000000e+00 : f32
    %22 = vector.broadcast %cst_19 : f32 to vector<8x128xf32>
    %23 = arith.addf %11, %22 : vector<8x128xf32>
    %24 = arith.mulf %23, %23 : vector<8x128xf32>
    %cst_20 = arith.constant 2.500000e-01 : f32
    %25 = vector.broadcast %cst_20 : f32 to vector<8x128xf32>
    %26 = arith.mulf %25, %24 : vector<8x128xf32>
    %cst_21 = arith.constant 0.000000e+00 : f32
    %27 = vector.broadcast %cst_21 : f32 to vector<8x128xf32>
    %28 = arith.cmpf ogt, %11, %27 : vector<8x128xf32>
    %cst_22 = arith.constant 0.000000e+00 : f32
    %29 = vector.broadcast %cst_22 : f32 to vector<8x128xf32>
    %30 = arith.select %28, %11, %29 : vector<8x128xi1>, vector<8x128xf32>
    %31 = arith.select %21, %26, %30 : vector<8x128xi1>, vector<8x128xf32>
    %cst_23 = arith.constant 1.000000e+00 : f32
    %32 = vector.broadcast %cst_23 : f32 to vector<8x128xf32>
    %33 = arith.subf %11, %32 : vector<8x128xf32>
    %34 = arith.mulf %33, %33 : vector<8x128xf32>
    %cst_24 = arith.constant -2.500000e-01 : f32
    %35 = vector.broadcast %cst_24 : f32 to vector<8x128xf32>
    %36 = arith.mulf %35, %34 : vector<8x128xf32>
    %cst_25 = arith.constant 0.000000e+00 : f32
    %37 = vector.broadcast %cst_25 : f32 to vector<8x128xf32>
    %38 = arith.cmpf olt, %11, %37 : vector<8x128xf32>
    %cst_26 = arith.constant 0.000000e+00 : f32
    %39 = vector.broadcast %cst_26 : f32 to vector<8x128xf32>
    %40 = arith.select %38, %11, %39 : vector<8x128xi1>, vector<8x128xf32>
    %41 = arith.select %21, %36, %40 : vector<8x128xi1>, vector<8x128xf32>
    %cst_27 = arith.constant 5.000000e-01 : f32
    %42 = vector.broadcast %cst_27 : f32 to vector<8x128xf32>
    %43 = arith.mulf %42, %7 : vector<8x128xf32>
    %cst_28 = arith.constant 1.000000e+00 : f32
    %44 = vector.broadcast %cst_28 : f32 to vector<8x128xf32>
    %45 = arith.addf %44, %11 : vector<8x128xf32>
    %46 = arith.mulf %43, %45 : vector<8x128xf32>
    %cst_29 = arith.constant 1.000000e+00 : f32
    %47 = vector.broadcast %cst_29 : f32 to vector<8x128xf32>
    %48 = arith.cmpf ogt, %11, %47 : vector<8x128xf32>
    %cst_30 = arith.constant 0.000000e+00 : f32
    %49 = vector.broadcast %cst_30 : f32 to vector<8x128xf32>
    %50 = arith.select %48, %7, %49 : vector<8x128xi1>, vector<8x128xf32>
    %51 = arith.select %21, %46, %50 : vector<8x128xi1>, vector<8x128xf32>
    %cst_31 = arith.constant 5.000000e-01 : f32
    %52 = vector.broadcast %cst_31 : f32 to vector<8x128xf32>
    %53 = arith.mulf %52, %7 : vector<8x128xf32>
    %cst_32 = arith.constant 1.000000e+00 : f32
    %54 = vector.broadcast %cst_32 : f32 to vector<8x128xf32>
    %55 = arith.subf %54, %11 : vector<8x128xf32>
    %56 = arith.mulf %53, %55 : vector<8x128xf32>
    %cst_33 = arith.constant -1.000000e+00 : f32
    %57 = vector.broadcast %cst_33 : f32 to vector<8x128xf32>
    %58 = arith.cmpf olt, %11, %57 : vector<8x128xf32>
    %cst_34 = arith.constant 0.000000e+00 : f32
    %59 = vector.broadcast %cst_34 : f32 to vector<8x128xf32>
    %60 = arith.subf %59, %7 : vector<8x128xf32>
    %cst_35 = arith.constant 0.000000e+00 : f32
    %61 = vector.broadcast %cst_35 : f32 to vector<8x128xf32>
    %62 = arith.select %58, %60, %61 : vector<8x128xi1>, vector<8x128xf32>
    %63 = arith.select %21, %56, %62 : vector<8x128xi1>, vector<8x128xf32>
    %c127_i32 = arith.constant 127 : i32
    %64 = tpu.dynamic_rotate %41 by %c127_i32 dim 1 : vector<8x128xf32>, i32 -> vector<8x128xf32>
    %65 = arith.addf %31, %64 : vector<8x128xf32>
    %c1_i32 = arith.constant 1 : i32
    %66 = tpu.dynamic_rotate %31 by %c1_i32 dim 1 : vector<8x128xf32>, i32 -> vector<8x128xf32>
    %67 = arith.addf %66, %41 : vector<8x128xf32>
    %c127_i32_36 = arith.constant 127 : i32
    %68 = tpu.dynamic_rotate %63 by %c127_i32_36 dim 1 : vector<8x128xf32>, i32 -> vector<8x128xf32>
    %69 = arith.addf %51, %68 : vector<8x128xf32>
    %c1_i32_37 = arith.constant 1 : i32
    %70 = tpu.dynamic_rotate %51 by %c1_i32_37 dim 1 : vector<8x128xf32>, i32 -> vector<8x128xf32>
    %71 = arith.addf %70, %63 : vector<8x128xf32>
    %72 = math.absf %17 : vector<8x128xf32>
    %cst_38 = arith.constant 1.000000e+00 : f32
    %73 = vector.broadcast %cst_38 : f32 to vector<8x128xf32>
    %74 = arith.cmpf ole, %72, %73 : vector<8x128xf32>
    %cst_39 = arith.constant 1.000000e+00 : f32
    %75 = vector.broadcast %cst_39 : f32 to vector<8x128xf32>
    %76 = arith.addf %17, %75 : vector<8x128xf32>
    %77 = arith.mulf %76, %76 : vector<8x128xf32>
    %cst_40 = arith.constant 2.500000e-01 : f32
    %78 = vector.broadcast %cst_40 : f32 to vector<8x128xf32>
    %79 = arith.mulf %78, %77 : vector<8x128xf32>
    %cst_41 = arith.constant 0.000000e+00 : f32
    %80 = vector.broadcast %cst_41 : f32 to vector<8x128xf32>
    %81 = arith.cmpf ogt, %17, %80 : vector<8x128xf32>
    %cst_42 = arith.constant 0.000000e+00 : f32
    %82 = vector.broadcast %cst_42 : f32 to vector<8x128xf32>
    %83 = arith.select %81, %17, %82 : vector<8x128xi1>, vector<8x128xf32>
    %84 = arith.select %74, %79, %83 : vector<8x128xi1>, vector<8x128xf32>
    %cst_43 = arith.constant 1.000000e+00 : f32
    %85 = vector.broadcast %cst_43 : f32 to vector<8x128xf32>
    %86 = arith.subf %17, %85 : vector<8x128xf32>
    %87 = arith.mulf %86, %86 : vector<8x128xf32>
    %cst_44 = arith.constant -2.500000e-01 : f32
    %88 = vector.broadcast %cst_44 : f32 to vector<8x128xf32>
    %89 = arith.mulf %88, %87 : vector<8x128xf32>
    %cst_45 = arith.constant 0.000000e+00 : f32
    %90 = vector.broadcast %cst_45 : f32 to vector<8x128xf32>
    %91 = arith.cmpf olt, %17, %90 : vector<8x128xf32>
    %cst_46 = arith.constant 0.000000e+00 : f32
    %92 = vector.broadcast %cst_46 : f32 to vector<8x128xf32>
    %93 = arith.select %91, %17, %92 : vector<8x128xi1>, vector<8x128xf32>
    %94 = arith.select %74, %89, %93 : vector<8x128xi1>, vector<8x128xf32>
    %c127_i32_47 = arith.constant 127 : i32
    %95 = tpu.dynamic_rotate %94 by %c127_i32_47 dim 1 : vector<8x128xf32>, i32 -> vector<8x128xf32>
    %96 = arith.addf %84, %95 : vector<8x128xf32>
    %c1_i32_48 = arith.constant 1 : i32
    %97 = tpu.dynamic_rotate %84 by %c1_i32_48 dim 1 : vector<8x128xf32>, i32 -> vector<8x128xf32>
    %98 = arith.addf %97, %94 : vector<8x128xf32>
    %c127_i32_49 = arith.constant 127 : i32
    %99 = tpu.dynamic_rotate %17 by %c127_i32_49 dim 1 : vector<8x128xf32>, i32 -> vector<8x128xf32>
    %c1_i32_50 = arith.constant 1 : i32
    %100 = tpu.dynamic_rotate %17 by %c1_i32_50 dim 1 : vector<8x128xf32>, i32 -> vector<8x128xf32>
    %cst_51 = arith.constant 0.000000e+00 : f32
    %101 = vector.broadcast %cst_51 : f32 to vector<8x128xf32>
    %102 = arith.cmpf ogt, %96, %101 : vector<8x128xf32>
    %cst_52 = arith.constant 0.000000e+00 : f32
    %103 = vector.broadcast %cst_52 : f32 to vector<8x128xf32>
    %104 = arith.cmpf olt, %96, %103 : vector<8x128xf32>
    %cst_53 = arith.constant 0.000000e+00 : f32
    %105 = vector.broadcast %cst_53 : f32 to vector<8x128xf32>
    %106 = arith.select %104, %99, %105 : vector<8x128xi1>, vector<8x128xf32>
    %107 = arith.select %102, %17, %106 : vector<8x128xi1>, vector<8x128xf32>
    %cst_54 = arith.constant 0.000000e+00 : f32
    %108 = vector.broadcast %cst_54 : f32 to vector<8x128xf32>
    %109 = arith.cmpf ogt, %98, %108 : vector<8x128xf32>
    %cst_55 = arith.constant 0.000000e+00 : f32
    %110 = vector.broadcast %cst_55 : f32 to vector<8x128xf32>
    %111 = arith.cmpf olt, %98, %110 : vector<8x128xf32>
    %cst_56 = arith.constant 0.000000e+00 : f32
    %112 = vector.broadcast %cst_56 : f32 to vector<8x128xf32>
    %113 = arith.select %111, %100, %112 : vector<8x128xi1>, vector<8x128xf32>
    %114 = arith.select %109, %17, %113 : vector<8x128xi1>, vector<8x128xf32>
    %115 = math.absf %18 : vector<8x128xf32>
    %cst_57 = arith.constant 1.000000e+00 : f32
    %116 = vector.broadcast %cst_57 : f32 to vector<8x128xf32>
    %117 = arith.cmpf ole, %115, %116 : vector<8x128xf32>
    %cst_58 = arith.constant 1.000000e+00 : f32
    %118 = vector.broadcast %cst_58 : f32 to vector<8x128xf32>
    %119 = arith.addf %18, %118 : vector<8x128xf32>
    %120 = arith.mulf %119, %119 : vector<8x128xf32>
    %cst_59 = arith.constant 2.500000e-01 : f32
    %121 = vector.broadcast %cst_59 : f32 to vector<8x128xf32>
    %122 = arith.mulf %121, %120 : vector<8x128xf32>
    %cst_60 = arith.constant 0.000000e+00 : f32
    %123 = vector.broadcast %cst_60 : f32 to vector<8x128xf32>
    %124 = arith.cmpf ogt, %18, %123 : vector<8x128xf32>
    %cst_61 = arith.constant 0.000000e+00 : f32
    %125 = vector.broadcast %cst_61 : f32 to vector<8x128xf32>
    %126 = arith.select %124, %18, %125 : vector<8x128xi1>, vector<8x128xf32>
    %127 = arith.select %117, %122, %126 : vector<8x128xi1>, vector<8x128xf32>
    %cst_62 = arith.constant 1.000000e+00 : f32
    %128 = vector.broadcast %cst_62 : f32 to vector<8x128xf32>
    %129 = arith.subf %18, %128 : vector<8x128xf32>
    %130 = arith.mulf %129, %129 : vector<8x128xf32>
    %cst_63 = arith.constant -2.500000e-01 : f32
    %131 = vector.broadcast %cst_63 : f32 to vector<8x128xf32>
    %132 = arith.mulf %131, %130 : vector<8x128xf32>
    %cst_64 = arith.constant 0.000000e+00 : f32
    %133 = vector.broadcast %cst_64 : f32 to vector<8x128xf32>
    %134 = arith.cmpf olt, %18, %133 : vector<8x128xf32>
    %cst_65 = arith.constant 0.000000e+00 : f32
    %135 = vector.broadcast %cst_65 : f32 to vector<8x128xf32>
    %136 = arith.select %134, %18, %135 : vector<8x128xi1>, vector<8x128xf32>
    %137 = arith.select %117, %132, %136 : vector<8x128xi1>, vector<8x128xf32>
    %c127_i32_66 = arith.constant 127 : i32
    %138 = tpu.dynamic_rotate %137 by %c127_i32_66 dim 1 : vector<8x128xf32>, i32 -> vector<8x128xf32>
    %139 = arith.addf %127, %138 : vector<8x128xf32>
    %c1_i32_67 = arith.constant 1 : i32
    %140 = tpu.dynamic_rotate %127 by %c1_i32_67 dim 1 : vector<8x128xf32>, i32 -> vector<8x128xf32>
    %141 = arith.addf %140, %137 : vector<8x128xf32>
    %c127_i32_68 = arith.constant 127 : i32
    %142 = tpu.dynamic_rotate %18 by %c127_i32_68 dim 1 : vector<8x128xf32>, i32 -> vector<8x128xf32>
    %c1_i32_69 = arith.constant 1 : i32
    %143 = tpu.dynamic_rotate %18 by %c1_i32_69 dim 1 : vector<8x128xf32>, i32 -> vector<8x128xf32>
    %cst_70 = arith.constant 0.000000e+00 : f32
    %144 = vector.broadcast %cst_70 : f32 to vector<8x128xf32>
    %145 = arith.cmpf ogt, %139, %144 : vector<8x128xf32>
    %cst_71 = arith.constant 0.000000e+00 : f32
    %146 = vector.broadcast %cst_71 : f32 to vector<8x128xf32>
    %147 = arith.cmpf olt, %139, %146 : vector<8x128xf32>
    %cst_72 = arith.constant 0.000000e+00 : f32
    %148 = vector.broadcast %cst_72 : f32 to vector<8x128xf32>
    %149 = arith.select %147, %142, %148 : vector<8x128xi1>, vector<8x128xf32>
    %150 = arith.select %145, %18, %149 : vector<8x128xi1>, vector<8x128xf32>
    %cst_73 = arith.constant 0.000000e+00 : f32
    %151 = vector.broadcast %cst_73 : f32 to vector<8x128xf32>
    %152 = arith.cmpf ogt, %141, %151 : vector<8x128xf32>
    %cst_74 = arith.constant 0.000000e+00 : f32
    %153 = vector.broadcast %cst_74 : f32 to vector<8x128xf32>
    %154 = arith.cmpf olt, %141, %153 : vector<8x128xf32>
    %cst_75 = arith.constant 0.000000e+00 : f32
    %155 = vector.broadcast %cst_75 : f32 to vector<8x128xf32>
    %156 = arith.select %154, %143, %155 : vector<8x128xi1>, vector<8x128xf32>
    %157 = arith.select %152, %18, %156 : vector<8x128xi1>, vector<8x128xf32>
    %158 = arith.addf %107, %150 : vector<8x128xf32>
    %159 = arith.mulf %65, %158 : vector<8x128xf32>
    %160 = arith.addf %114, %157 : vector<8x128xf32>
    %161 = arith.mulf %67, %160 : vector<8x128xf32>
    %162 = arith.subf %159, %161 : vector<8x128xf32>
    %163 = arith.subf %69, %71 : vector<8x128xf32>
    %164 = arith.addf %162, %163 : vector<8x128xf32>
    %c1_76 = arith.constant 1 : index
    %c0_77 = arith.constant 0 : index
    %c0_78 = arith.constant 0 : index
    %c0_79 = arith.constant 0 : index
    %165 = vector.load %arg2[%c1_76, %c0_77, %c0_78, %c0_79] : memref<2x6x8x128xf32, #tpu.memory_space<vmem>>, vector<1x1x8x128xf32>
    %166 = vector.shape_cast %165 : vector<1x1x8x128xf32> to vector<8x128xf32>
    %c1_80 = arith.constant 1 : index
    %c1_81 = arith.constant 1 : index
    %c0_82 = arith.constant 0 : index
    %c0_83 = arith.constant 0 : index
    %167 = vector.load %arg2[%c1_80, %c1_81, %c0_82, %c0_83] : memref<2x6x8x128xf32, #tpu.memory_space<vmem>>, vector<1x1x8x128xf32>
    %168 = vector.shape_cast %167 : vector<1x1x8x128xf32> to vector<8x128xf32>
    %c1_84 = arith.constant 1 : index
    %c2_85 = arith.constant 2 : index
    %c0_86 = arith.constant 0 : index
    %c0_87 = arith.constant 0 : index
    %169 = vector.load %arg2[%c1_84, %c2_85, %c0_86, %c0_87] : memref<2x6x8x128xf32, #tpu.memory_space<vmem>>, vector<1x1x8x128xf32>
    %170 = vector.shape_cast %169 : vector<1x1x8x128xf32> to vector<8x128xf32>
    %c1_88 = arith.constant 1 : index
    %c3_89 = arith.constant 3 : index
    %c0_90 = arith.constant 0 : index
    %c0_91 = arith.constant 0 : index
    %171 = vector.load %arg2[%c1_88, %c3_89, %c0_90, %c0_91] : memref<2x6x8x128xf32, #tpu.memory_space<vmem>>, vector<1x1x8x128xf32>
    %172 = vector.shape_cast %171 : vector<1x1x8x128xf32> to vector<8x128xf32>
    %c1_92 = arith.constant 1 : index
    %c4_93 = arith.constant 4 : index
    %c0_94 = arith.constant 0 : index
    %c0_95 = arith.constant 0 : index
    %173 = vector.load %arg2[%c1_92, %c4_93, %c0_94, %c0_95] : memref<2x6x8x128xf32, #tpu.memory_space<vmem>>, vector<1x1x8x128xf32>
    %174 = vector.shape_cast %173 : vector<1x1x8x128xf32> to vector<8x128xf32>
    %c1_96 = arith.constant 1 : index
    %c5_97 = arith.constant 5 : index
    %c0_98 = arith.constant 0 : index
    %c0_99 = arith.constant 0 : index
    %175 = vector.load %arg2[%c1_96, %c5_97, %c0_98, %c0_99] : memref<2x6x8x128xf32, #tpu.memory_space<vmem>>, vector<1x1x8x128xf32>
    %176 = vector.shape_cast %175 : vector<1x1x8x128xf32> to vector<8x128xf32>
    %cst_100 = arith.constant 401.881195 : f32
    %177 = vector.broadcast %cst_100 : f32 to vector<8x128xf32>
    %178 = arith.mulf %177, %174 : vector<8x128xf32>
    %179 = math.absf %178 : vector<8x128xf32>
    %180 = math.sqrt %179 : vector<8x128xf32>
    %181 = arith.mulf %166, %180 : vector<8x128xf32>
    %182 = arith.mulf %181, %168 : vector<8x128xf32>
    %183 = arith.mulf %181, %170 : vector<8x128xf32>
    %184 = math.absf %176 : vector<8x128xf32>
    %cst_101 = arith.constant 1.000000e+00 : f32
    %185 = vector.broadcast %cst_101 : f32 to vector<8x128xf32>
    %186 = arith.cmpf ole, %184, %185 : vector<8x128xf32>
    %cst_102 = arith.constant 1.000000e+00 : f32
    %187 = vector.broadcast %cst_102 : f32 to vector<8x128xf32>
    %188 = arith.addf %176, %187 : vector<8x128xf32>
    %189 = arith.mulf %188, %188 : vector<8x128xf32>
    %cst_103 = arith.constant 2.500000e-01 : f32
    %190 = vector.broadcast %cst_103 : f32 to vector<8x128xf32>
    %191 = arith.mulf %190, %189 : vector<8x128xf32>
    %cst_104 = arith.constant 0.000000e+00 : f32
    %192 = vector.broadcast %cst_104 : f32 to vector<8x128xf32>
    %193 = arith.cmpf ogt, %176, %192 : vector<8x128xf32>
    %cst_105 = arith.constant 0.000000e+00 : f32
    %194 = vector.broadcast %cst_105 : f32 to vector<8x128xf32>
    %195 = arith.select %193, %176, %194 : vector<8x128xi1>, vector<8x128xf32>
    %196 = arith.select %186, %191, %195 : vector<8x128xi1>, vector<8x128xf32>
    %cst_106 = arith.constant 1.000000e+00 : f32
    %197 = vector.broadcast %cst_106 : f32 to vector<8x128xf32>
    %198 = arith.subf %176, %197 : vector<8x128xf32>
    %199 = arith.mulf %198, %198 : vector<8x128xf32>
    %cst_107 = arith.constant -2.500000e-01 : f32
    %200 = vector.broadcast %cst_107 : f32 to vector<8x128xf32>
    %201 = arith.mulf %200, %199 : vector<8x128xf32>
    %cst_108 = arith.constant 0.000000e+00 : f32
    %202 = vector.broadcast %cst_108 : f32 to vector<8x128xf32>
    %203 = arith.cmpf olt, %176, %202 : vector<8x128xf32>
    %cst_109 = arith.constant 0.000000e+00 : f32
    %204 = vector.broadcast %cst_109 : f32 to vector<8x128xf32>
    %205 = arith.select %203, %176, %204 : vector<8x128xi1>, vector<8x128xf32>
    %206 = arith.select %186, %201, %205 : vector<8x128xi1>, vector<8x128xf32>
    %cst_110 = arith.constant 5.000000e-01 : f32
    %207 = vector.broadcast %cst_110 : f32 to vector<8x128xf32>
    %208 = arith.mulf %207, %172 : vector<8x128xf32>
    %cst_111 = arith.constant 1.000000e+00 : f32
    %209 = vector.broadcast %cst_111 : f32 to vector<8x128xf32>
    %210 = arith.addf %209, %176 : vector<8x128xf32>
    %211 = arith.mulf %208, %210 : vector<8x128xf32>
    %cst_112 = arith.constant 1.000000e+00 : f32
    %212 = vector.broadcast %cst_112 : f32 to vector<8x128xf32>
    %213 = arith.cmpf ogt, %176, %212 : vector<8x128xf32>
    %cst_113 = arith.constant 0.000000e+00 : f32
    %214 = vector.broadcast %cst_113 : f32 to vector<8x128xf32>
    %215 = arith.select %213, %172, %214 : vector<8x128xi1>, vector<8x128xf32>
    %216 = arith.select %186, %211, %215 : vector<8x128xi1>, vector<8x128xf32>
    %cst_114 = arith.constant 5.000000e-01 : f32
    %217 = vector.broadcast %cst_114 : f32 to vector<8x128xf32>
    %218 = arith.mulf %217, %172 : vector<8x128xf32>
    %cst_115 = arith.constant 1.000000e+00 : f32
    %219 = vector.broadcast %cst_115 : f32 to vector<8x128xf32>
    %220 = arith.subf %219, %176 : vector<8x128xf32>
    %221 = arith.mulf %218, %220 : vector<8x128xf32>
    %cst_116 = arith.constant -1.000000e+00 : f32
    %222 = vector.broadcast %cst_116 : f32 to vector<8x128xf32>
    %223 = arith.cmpf olt, %176, %222 : vector<8x128xf32>
    %cst_117 = arith.constant 0.000000e+00 : f32
    %224 = vector.broadcast %cst_117 : f32 to vector<8x128xf32>
    %225 = arith.subf %224, %172 : vector<8x128xf32>
    %cst_118 = arith.constant 0.000000e+00 : f32
    %226 = vector.broadcast %cst_118 : f32 to vector<8x128xf32>
    %227 = arith.select %223, %225, %226 : vector<8x128xi1>, vector<8x128xf32>
    %228 = arith.select %186, %221, %227 : vector<8x128xi1>, vector<8x128xf32>
    %c127_i32_119 = arith.constant 127 : i32
    %229 = tpu.dynamic_rotate %206 by %c127_i32_119 dim 1 : vector<8x128xf32>, i32 -> vector<8x128xf32>
    %230 = arith.addf %196, %229 : vector<8x128xf32>
    %c1_i32_120 = arith.constant 1 : i32
    %231 = tpu.dynamic_rotate %196 by %c1_i32_120 dim 1 : vector<8x128xf32>, i32 -> vector<8x128xf32>
    %232 = arith.addf %231, %206 : vector<8x128xf32>
    %c127_i32_121 = arith.constant 127 : i32
    %233 = tpu.dynamic_rotate %228 by %c127_i32_121 dim 1 : vector<8x128xf32>, i32 -> vector<8x128xf32>
    %234 = arith.addf %216, %233 : vector<8x128xf32>
    %c1_i32_122 = arith.constant 1 : i32
    %235 = tpu.dynamic_rotate %216 by %c1_i32_122 dim 1 : vector<8x128xf32>, i32 -> vector<8x128xf32>
    %236 = arith.addf %235, %228 : vector<8x128xf32>
    %237 = math.absf %182 : vector<8x128xf32>
    %cst_123 = arith.constant 1.000000e+00 : f32
    %238 = vector.broadcast %cst_123 : f32 to vector<8x128xf32>
    %239 = arith.cmpf ole, %237, %238 : vector<8x128xf32>
    %cst_124 = arith.constant 1.000000e+00 : f32
    %240 = vector.broadcast %cst_124 : f32 to vector<8x128xf32>
    %241 = arith.addf %182, %240 : vector<8x128xf32>
    %242 = arith.mulf %241, %241 : vector<8x128xf32>
    %cst_125 = arith.constant 2.500000e-01 : f32
    %243 = vector.broadcast %cst_125 : f32 to vector<8x128xf32>
    %244 = arith.mulf %243, %242 : vector<8x128xf32>
    %cst_126 = arith.constant 0.000000e+00 : f32
    %245 = vector.broadcast %cst_126 : f32 to vector<8x128xf32>
    %246 = arith.cmpf ogt, %182, %245 : vector<8x128xf32>
    %cst_127 = arith.constant 0.000000e+00 : f32
    %247 = vector.broadcast %cst_127 : f32 to vector<8x128xf32>
    %248 = arith.select %246, %182, %247 : vector<8x128xi1>, vector<8x128xf32>
    %249 = arith.select %239, %244, %248 : vector<8x128xi1>, vector<8x128xf32>
    %cst_128 = arith.constant 1.000000e+00 : f32
    %250 = vector.broadcast %cst_128 : f32 to vector<8x128xf32>
    %251 = arith.subf %182, %250 : vector<8x128xf32>
    %252 = arith.mulf %251, %251 : vector<8x128xf32>
    %cst_129 = arith.constant -2.500000e-01 : f32
    %253 = vector.broadcast %cst_129 : f32 to vector<8x128xf32>
    %254 = arith.mulf %253, %252 : vector<8x128xf32>
    %cst_130 = arith.constant 0.000000e+00 : f32
    %255 = vector.broadcast %cst_130 : f32 to vector<8x128xf32>
    %256 = arith.cmpf olt, %182, %255 : vector<8x128xf32>
    %cst_131 = arith.constant 0.000000e+00 : f32
    %257 = vector.broadcast %cst_131 : f32 to vector<8x128xf32>
    %258 = arith.select %256, %182, %257 : vector<8x128xi1>, vector<8x128xf32>
    %259 = arith.select %239, %254, %258 : vector<8x128xi1>, vector<8x128xf32>
    %c127_i32_132 = arith.constant 127 : i32
    %260 = tpu.dynamic_rotate %259 by %c127_i32_132 dim 1 : vector<8x128xf32>, i32 -> vector<8x128xf32>
    %261 = arith.addf %249, %260 : vector<8x128xf32>
    %c1_i32_133 = arith.constant 1 : i32
    %262 = tpu.dynamic_rotate %249 by %c1_i32_133 dim 1 : vector<8x128xf32>, i32 -> vector<8x128xf32>
    %263 = arith.addf %262, %259 : vector<8x128xf32>
    %c127_i32_134 = arith.constant 127 : i32
    %264 = tpu.dynamic_rotate %182 by %c127_i32_134 dim 1 : vector<8x128xf32>, i32 -> vector<8x128xf32>
    %c1_i32_135 = arith.constant 1 : i32
    %265 = tpu.dynamic_rotate %182 by %c1_i32_135 dim 1 : vector<8x128xf32>, i32 -> vector<8x128xf32>
    %cst_136 = arith.constant 0.000000e+00 : f32
    %266 = vector.broadcast %cst_136 : f32 to vector<8x128xf32>
    %267 = arith.cmpf ogt, %261, %266 : vector<8x128xf32>
    %cst_137 = arith.constant 0.000000e+00 : f32
    %268 = vector.broadcast %cst_137 : f32 to vector<8x128xf32>
    %269 = arith.cmpf olt, %261, %268 : vector<8x128xf32>
    %cst_138 = arith.constant 0.000000e+00 : f32
    %270 = vector.broadcast %cst_138 : f32 to vector<8x128xf32>
    %271 = arith.select %269, %264, %270 : vector<8x128xi1>, vector<8x128xf32>
    %272 = arith.select %267, %182, %271 : vector<8x128xi1>, vector<8x128xf32>
    %cst_139 = arith.constant 0.000000e+00 : f32
    %273 = vector.broadcast %cst_139 : f32 to vector<8x128xf32>
    %274 = arith.cmpf ogt, %263, %273 : vector<8x128xf32>
    %cst_140 = arith.constant 0.000000e+00 : f32
    %275 = vector.broadcast %cst_140 : f32 to vector<8x128xf32>
    %276 = arith.cmpf olt, %263, %275 : vector<8x128xf32>
    %cst_141 = arith.constant 0.000000e+00 : f32
    %277 = vector.broadcast %cst_141 : f32 to vector<8x128xf32>
    %278 = arith.select %276, %265, %277 : vector<8x128xi1>, vector<8x128xf32>
    %279 = arith.select %274, %182, %278 : vector<8x128xi1>, vector<8x128xf32>
    %280 = math.absf %183 : vector<8x128xf32>
    %cst_142 = arith.constant 1.000000e+00 : f32
    %281 = vector.broadcast %cst_142 : f32 to vector<8x128xf32>
    %282 = arith.cmpf ole, %280, %281 : vector<8x128xf32>
    %cst_143 = arith.constant 1.000000e+00 : f32
    %283 = vector.broadcast %cst_143 : f32 to vector<8x128xf32>
    %284 = arith.addf %183, %283 : vector<8x128xf32>
    %285 = arith.mulf %284, %284 : vector<8x128xf32>
    %cst_144 = arith.constant 2.500000e-01 : f32
    %286 = vector.broadcast %cst_144 : f32 to vector<8x128xf32>
    %287 = arith.mulf %286, %285 : vector<8x128xf32>
    %cst_145 = arith.constant 0.000000e+00 : f32
    %288 = vector.broadcast %cst_145 : f32 to vector<8x128xf32>
    %289 = arith.cmpf ogt, %183, %288 : vector<8x128xf32>
    %cst_146 = arith.constant 0.000000e+00 : f32
    %290 = vector.broadcast %cst_146 : f32 to vector<8x128xf32>
    %291 = arith.select %289, %183, %290 : vector<8x128xi1>, vector<8x128xf32>
    %292 = arith.select %282, %287, %291 : vector<8x128xi1>, vector<8x128xf32>
    %cst_147 = arith.constant 1.000000e+00 : f32
    %293 = vector.broadcast %cst_147 : f32 to vector<8x128xf32>
    %294 = arith.subf %183, %293 : vector<8x128xf32>
    %295 = arith.mulf %294, %294 : vector<8x128xf32>
    %cst_148 = arith.constant -2.500000e-01 : f32
    %296 = vector.broadcast %cst_148 : f32 to vector<8x128xf32>
    %297 = arith.mulf %296, %295 : vector<8x128xf32>
    %cst_149 = arith.constant 0.000000e+00 : f32
    %298 = vector.broadcast %cst_149 : f32 to vector<8x128xf32>
    %299 = arith.cmpf olt, %183, %298 : vector<8x128xf32>
    %cst_150 = arith.constant 0.000000e+00 : f32
    %300 = vector.broadcast %cst_150 : f32 to vector<8x128xf32>
    %301 = arith.select %299, %183, %300 : vector<8x128xi1>, vector<8x128xf32>
    %302 = arith.select %282, %297, %301 : vector<8x128xi1>, vector<8x128xf32>
    %c127_i32_151 = arith.constant 127 : i32
    %303 = tpu.dynamic_rotate %302 by %c127_i32_151 dim 1 : vector<8x128xf32>, i32 -> vector<8x128xf32>
    %304 = arith.addf %292, %303 : vector<8x128xf32>
    %c1_i32_152 = arith.constant 1 : i32
    %305 = tpu.dynamic_rotate %292 by %c1_i32_152 dim 1 : vector<8x128xf32>, i32 -> vector<8x128xf32>
    %306 = arith.addf %305, %302 : vector<8x128xf32>
    %c127_i32_153 = arith.constant 127 : i32
    %307 = tpu.dynamic_rotate %183 by %c127_i32_153 dim 1 : vector<8x128xf32>, i32 -> vector<8x128xf32>
    %c1_i32_154 = arith.constant 1 : i32
    %308 = tpu.dynamic_rotate %183 by %c1_i32_154 dim 1 : vector<8x128xf32>, i32 -> vector<8x128xf32>
    %cst_155 = arith.constant 0.000000e+00 : f32
    %309 = vector.broadcast %cst_155 : f32 to vector<8x128xf32>
    %310 = arith.cmpf ogt, %304, %309 : vector<8x128xf32>
    %cst_156 = arith.constant 0.000000e+00 : f32
    %311 = vector.broadcast %cst_156 : f32 to vector<8x128xf32>
    %312 = arith.cmpf olt, %304, %311 : vector<8x128xf32>
    %cst_157 = arith.constant 0.000000e+00 : f32
    %313 = vector.broadcast %cst_157 : f32 to vector<8x128xf32>
    %314 = arith.select %312, %307, %313 : vector<8x128xi1>, vector<8x128xf32>
    %315 = arith.select %310, %183, %314 : vector<8x128xi1>, vector<8x128xf32>
    %cst_158 = arith.constant 0.000000e+00 : f32
    %316 = vector.broadcast %cst_158 : f32 to vector<8x128xf32>
    %317 = arith.cmpf ogt, %306, %316 : vector<8x128xf32>
    %cst_159 = arith.constant 0.000000e+00 : f32
    %318 = vector.broadcast %cst_159 : f32 to vector<8x128xf32>
    %319 = arith.cmpf olt, %306, %318 : vector<8x128xf32>
    %cst_160 = arith.constant 0.000000e+00 : f32
    %320 = vector.broadcast %cst_160 : f32 to vector<8x128xf32>
    %321 = arith.select %319, %308, %320 : vector<8x128xi1>, vector<8x128xf32>
    %322 = arith.select %317, %183, %321 : vector<8x128xi1>, vector<8x128xf32>
    %323 = arith.addf %272, %315 : vector<8x128xf32>
    %324 = arith.mulf %230, %323 : vector<8x128xf32>
    %325 = arith.addf %279, %322 : vector<8x128xf32>
    %326 = arith.mulf %232, %325 : vector<8x128xf32>
    %327 = arith.subf %324, %326 : vector<8x128xf32>
    %328 = arith.subf %234, %236 : vector<8x128xf32>
    %329 = arith.addf %327, %328 : vector<8x128xf32>
    %330 = arith.addf %164, %329 : vector<8x128xf32>
    %c0_161 = arith.constant 0 : index
    %c0_162 = arith.constant 0 : index
    %c0_163 = arith.constant 0 : index
    %c0_164 = arith.constant 0 : index
    %331 = vector.load %arg3[%c0_161, %c0_162, %c0_163, %c0_164] : memref<1x1x8x128xf32, #tpu.memory_space<vmem>>, vector<1x1x8x128xf32>
    %332 = vector.shape_cast %331 : vector<1x1x8x128xf32> to vector<8x128xf32>
    %333 = vector.shape_cast %330 : vector<8x128xf32> to vector<1x1x8x128xf32>
    tpu.vector_store %arg3[%c0_161, %c0_162, %c0_163, %c0_164], %333 {strides = array<i32>} : memref<1x1x8x128xf32, #tpu.memory_space<vmem>>, vector<1x1x8x128xf32>,
    return
  }
  func.func @transform_0(%arg0: i32, %arg1: i32) -> (i32, i32, i32, i32) {
    %c0_i32 = arith.constant 0 : i32
    %c0_i32_0 = arith.constant 0 : i32
    %c0_i32_1 = arith.constant 0 : i32
    return %arg0, %c0_i32, %arg1, %c0_i32_0 : i32, i32, i32, i32
  }
  func.func @transform_1(%arg0: i32, %arg1: i32) -> (i32, i32, i32, i32) {
    %c0_i32 = arith.constant 0 : i32
    %c0_i32_0 = arith.constant 0 : i32
    %c0_i32_1 = arith.constant 0 : i32
    return %arg0, %arg1, %c0_i32, %c0_i32_0 : i32, i32, i32, i32
  }
}

</mosaic_0001>

<bundles_post_ra>
// kernel: _mom_loss_single_jit.1
= control target key start
LH: loop header
LB: loop body
LE: loop exit
PB: predicated region body
PF: predicated region fallthrough
CT: control target
= control target key end

     0   :  { %6 = vsyncpa [#allocation3], 0  ;;  %s345_s9 = smov [#allocation2]   ;;  %s346_s11 = smov 128   ;;  %s565_s0 = inlined_call_operand.hbm [shape: f32[2,6,8,128], index: 0, kind: input, shape index: {}]   ;;  %s566_s1 = inlined_call_operand.vmem [shape: f32[1,1,8,128], index: 1, kind: output, shape index: {}]  }
   0x1   :  { %s11_s8 = sshll.u32 %s565_s0, 4  ;;  %s13_s10 = sshll.u32 %s345_s9, 4  ;;  %s12_s8 = int_to_ptr.hbm [resolvable:$true] %s11_s8  ;;  %s14_s10 = int_to_ptr.vmem [resolvable:$true] %s13_s10 }
   0x2   :  { %s347_s12 = smov 8  }
   0x3   :  { %19 = dma.hbm_to_vmem [thread:$0]  %s12_s8, 1536, %s14_s10, [#allocation3], %s346_s11, %s346_s11, %s347_s12  }
   0x4   :  { %343 = dma.done.wait [#allocation3], 1536  }
   0x5   :  { %344 = vsyncadd [#allocation3], 4294965760  ;;  %v30_v0 = vld [vmem:[#allocation2 + $0x18] sm:$0xff]  ;;  %v34_v1 = vld [vmem:[#allocation2 + $0x28] sm:$0xff]  ;;  %s348_s0 = smov 127   ;;  %s349_s13 = smov 1  }
   0x6   :  { %v52_v2 = vand.u32 2147483647, %v34_v1  ;;  %v66_v3 = vmul.f32 0.5, %v30_v0  ;;  %v71_v4 = vsub.f32 1.0, %v34_v1  ;;  %vm73_vm0 = vcmp.lt.f32.partialorder %v34_v1, -1.0  ;;  %v32_v7 = vld [vmem:[#allocation2 + $0x20] sm:$0xff] }
   0x7   :  { %v74_v5 = vsub.f32 0.0, %v30_v0  ;;  %v304_v6 = vadd.f32 -1.0, %v34_v1  ;;  %vm63_vm1 = vcmp.lt.f32.partialorder %v34_v1, 0.0  ;;  %v54_v10 = vadd.f32 1.0, %v34_v1  ;;  %v169_v13 = vld [vmem:[#allocation2 + $0x50] sm:$0xff]  ;;  %v24_v43 = vld [vmem:[#allocation2] sm:$0xff] }
   0x8   :  { %vm363_vm2 = vcmp.le.f32.partialorder %v52_v2, 1.0  ;;  %v72_v9 = vmul.f32 %v71_v4, %v66_v3  ;;  %v64_v15 = vsel %vm63_vm1, %v34_v1, 0.0  ;;  %vm68_vm3 = vcmp.gt.f32.partialorder %v34_v1, 1.0  ;;  %v28_v47 = vld [vmem:[#allocation2 + $0x10] sm:$0xff]  ;;  %v26_v49 = vld [vmem:[#allocation2 + $0x8] sm:$0xff]  ;;  %v163_v57 = vld [vmem:[#allocation2 + $0x38] sm:$0xff] }
   0x9   :  { %v75_v11 = vsel %vm73_vm0, %v74_v5, 0.0  ;;  %v61_v12 = vmul.f32 %v304_v6, %v304_v6  ;;  %v35_v16 = vmul.f32 401.8812, %v32_v7  ;;  %v55_v18 = vmul.f32 %v54_v10, %v54_v10  ;;  %v161_v52 = vld [vmem:[#allocation2 + $0x30] sm:$0xff]  ;;  %v165_v60 = vld [vmem:[#allocation2 + $0x40] sm:$0xff] }
   0xa   :  { %v369_v14 = vsel %vm363_vm2, %v72_v9, %v75_v11  ;;  %v172_v19 = vmul.f32 401.8812, %v169_v13  ;;  %v67_v20 = vmul.f32 %v66_v3, %v54_v10  ;;  %v69_v23 = vsel %vm68_vm3, %v30_v0, 0.0 }
   0xb   :  { %83 = vrot.lane.b32.xlu1 %v369_v14, %s348_s0  ;;  %v62_v17 = vmul.f32 -0.25, %v61_v12  ;;  %v36_v21 = vand.u32 2147483647, %v35_v16  ;;  %vm57_vm4 = vcmp.gt.f32.partialorder %v34_v1, 0.0  ;;  %v56_v25 = vmul.f32 0.25, %v55_v18 }
   0xc   :  { %v173_v24 = vand.u32 2147483647, %v172_v19  ;;  %v381_v26 = vsel %vm363_vm2, %v67_v20, %v69_v23  ;;  %v58_v27 = vsel %vm57_vm4, %v34_v1, 0.0 }
   0xd   :  { %v375_v22 = vsel %vm363_vm2, %v62_v17, %v64_v15  ;;  %315 = vrsqrt.f32 %v36_v21  ;;  %v387_v28 = vsel %vm363_vm2, %v56_v25, %v58_v27  ;;  %vm44_vm5 = vcmp.eq.f32.partialorder %v36_v21, inf }
   0xe   :  { %77 = vrot.lane.b32.xlu0 %v375_v22, %s348_s0  ;;  %317 = vrsqrt.f32 %v173_v24  ;;  %v47_v40 = vand.u32 2147483648, %v36_v21  ;;  %vm46_vm6 = vcmp.eq.f32.partialorder %v36_v21, 0.0  ;;  %vm181_vm7 = vcmp.eq.f32.partialorder %v173_v24, inf }
   0xf   :  { %v184_v45 = vand.u32 2147483648, %v173_v24  ;;  %vm183_vm8 = vcmp.eq.f32.partialorder %v173_v24, 0.0 }
  0x13   :  { %86 = vrot.lane.b32.xlu1 %v381_v26, %s349_s13  ;;  %v316_v29 = vpop.eup %315 }
  0x14   :  { %v318_v30 = vpop.eup %317  ;;  %v38_v31 = vmul.f32 %v316_v29, %v36_v21 }
  0x15   :  { %v175_v32 = vmul.f32 %v318_v30, %v173_v24 }
  0x16   :  { %80 = vrot.lane.b32.xlu0 %v387_v28, %s349_s13  ;;  %v39_v33 = vmul.f32 %v316_v29, %v38_v31 }
  0x17   :  { %v176_v34 = vmul.f32 %v318_v30, %v175_v32 }
  0x18   :  { %v40_v35 = vmul.f32 0.5, %v39_v33 }
  0x19   :  { %v177_v36 = vmul.f32 0.5, %v176_v34 }
  0x1a   :  { %v41_v37 = vsub.f32 1.5, %v40_v35 }
  0x1b   :  { %v178_v38 = vsub.f32 1.5, %v177_v36 }
  0x1c   :  { %v42_v39 = vmul.f32 %v316_v29, %v41_v37 }
  0x1d   :  { %v179_v41 = vmul.f32 %v318_v30, %v178_v38 }
  0x1e   :  { %v43_v42 = vmul.f32 %v42_v39, %v36_v21 }
  0x1f   :  { %v180_v44 = vmul.f32 %v179_v41, %v173_v24  ;;  %v171_v41 = vld [vmem:[#allocation2 + $0x58] sm:$0xff] }
  0x20   :  { %v45_v46 = vsel %vm44_vm5, %v36_v21, %v43_v42  ;;  %vm210_vm4 = vcmp.lt.f32.partialorder %v171_v41, -1.0 }
  0x21   :  { %v48_v48 = vsel %vm46_vm6, %v47_v40, %v45_v46  ;;  %v182_v50 = vsel %vm181_vm7, %v173_v24, %v180_v44  ;;  %v167_v46 = vld [vmem:[#allocation2 + $0x48] sm:$0xff]  ;;  %vm194_vm6 = vcmp.gt.f32.partialorder %v171_v41, 0.0 }
  0x22   :  { %v49_v51 = vmul.f32 %v48_v48, %v24_v43  ;;  %v185_v53 = vsel %vm183_vm8, %v184_v45, %v182_v50  ;;  %v191_v45 = vadd.f32 1.0, %v171_v41  ;;  %v203_v48 = vmul.f32 0.5, %v167_v46 }
  0x23   :  { %v186_v56 = vmul.f32 %v185_v53, %v161_v52  ;;  %v211_v52 = vsub.f32 0.0, %v167_v46  ;;  %v189_v53 = vand.u32 2147483647, %v171_v41  ;;  %vm200_vm8 = vcmp.lt.f32.partialorder %v171_v41, 0.0 }
  0x24   :  { %v391_v54 = vmul.f32 %v49_v51, %v28_v47  ;;  %v393_v55 = vmul.f32 %v49_v51, %v26_v49  ;;  %v208_v49 = vsub.f32 1.0, %v171_v41  ;;  %v192_v51 = vmul.f32 %v191_v45, %v191_v45 }
  0x25   :  { %v404_v62 = vmul.f32 %v186_v56, %v163_v57  ;;  %v407_v0 = vmul.f32 %v186_v56, %v165_v60  ;;  %v212_v60 = vsel %vm210_vm4, %v211_v52, 0.0  ;;  %vm501_vm7 = vcmp.le.f32.partialorder %v189_v53, 1.0 }
  0x26   :  { %141 = vrot.lane.b32.xlu2 %v391_v54, %s348_s0  ;;  %111 = vrot.lane.b32.xlu1 %v393_v55, %s349_s13  ;;  %v123_v58 = vadd.f32 1.0, %v391_v54  ;;  %v305_v59 = vadd.f32 -1.0, %v393_v55  ;;  %v306_v61 = vadd.f32 -1.0, %v391_v54  ;;  %v121_v63 = vand.u32 2147483647, %v391_v54 }
  0x27   :  { %109 = vrot.lane.b32.xlu0 %v393_v55, %s348_s0  ;;  %vm126_vm9 = vcmp.gt.f32.partialorder %v391_v54, 0.0  ;;  %v89_v4 = vand.u32 2147483647, %v393_v55  ;;  %vm100_vm10 = vcmp.lt.f32.partialorder %v393_v55, 0.0  ;;  %vm132_vm12 = vcmp.lt.f32.partialorder %v391_v54, 0.0 }
  0x28   :  { %v124_v1 = vmul.f32 %v123_v58, %v123_v58  ;;  %v98_v2 = vmul.f32 %v305_v59, %v305_v59  ;;  %v130_v3 = vmul.f32 %v306_v61, %v306_v61  ;;  %vm416_vm11 = vcmp.le.f32.partialorder %v121_v63, 1.0 }
  0x29   :  { %v127_v6 = vsel %vm126_vm9, %v391_v54, 0.0  ;;  %v309_v9 = vadd.f32 -1.0, %v407_v0  ;;  %v91_v10 = vadd.f32 1.0, %v393_v55  ;;  %vm426_vm13 = vcmp.le.f32.partialorder %v89_v4, 1.0 }
  0x2a   :  { %v125_v7 = vmul.f32 0.25, %v124_v1  ;;  %v99_v8 = vmul.f32 -0.25, %v98_v2  ;;  %v131_v11 = vmul.f32 -0.25, %v130_v3  ;;  %v101_v13 = vsel %vm100_vm10, %v393_v55, 0.0 }
  0x2b   :  { %v228_v15 = vadd.f32 1.0, %v404_v62  ;;  %v133_v16 = vsel %vm132_vm12, %v391_v54, 0.0  ;;  %v267_v19 = vmul.f32 %v309_v9, %v309_v9  ;;  %v92_v20 = vmul.f32 %v91_v10, %v91_v10 }
  0x2c   :  { %v435_v17 = vsel %vm416_vm11, %v125_v7, %v127_v6  ;;  %v439_v18 = vsel %vm426_vm13, %v99_v8, %v101_v13  ;;  %v443_v21 = vsel %vm416_vm11, %v131_v11, %v133_v16  ;;  %v258_v23 = vand.u32 2147483647, %v407_v0 }
  0x2d   :  { %v229_v24 = vmul.f32 %v228_v15, %v228_v15  ;;  %vm269_vm14 = vcmp.lt.f32.partialorder %v407_v0, 0.0  ;;  %v226_v25 = vand.u32 2147483647, %v404_v62  ;;  %vm94_vm15 = vcmp.gt.f32.partialorder %v393_v55, 0.0 }
  0x2e   :  { %248 = vrot.lane.b32.xlu2 %v404_v62, %s349_s13  ;;  %246 = vrot.lane.b32.xlu1 %v404_v62, %s348_s0  ;;  %vm231_vm0 = vcmp.gt.f32.partialorder %v404_v62, 0.0  ;;  %v268_v27 = vmul.f32 -0.25, %v267_v19  ;;  %v93_v29 = vmul.f32 0.25, %v92_v20  ;;  %v308_v30 = vadd.f32 -1.0, %v404_v62 }
  0x2f   :  { %143 = vrot.lane.b32.xlu0 %v391_v54, %s349_s13  ;;  %vm457_vm1 = vcmp.le.f32.partialorder %v258_v23, 1.0  ;;  %v270_v32 = vsel %vm269_vm14, %v407_v0, 0.0  ;;  %v230_v33 = vmul.f32 0.25, %v229_v24  ;;  %v95_v34 = vsel %vm94_vm15, %v393_v55, 0.0 }
  0x30   :  { %vm463_vm2 = vcmp.le.f32.partialorder %v226_v25, 1.0  ;;  %v232_v36 = vsel %vm231_vm0, %v404_v62, 0.0  ;;  %v470_v37 = vsel %vm457_vm1, %v268_v27, %v270_v32  ;;  %v474_v38 = vsel %vm426_vm13, %v93_v29, %v95_v34 }
  0x31   :  { %v235_v39 = vmul.f32 %v308_v30, %v308_v30  ;;  %v478_v40 = vsel %vm463_vm2, %v230_v33, %v232_v36  ;;  %vm237_vm3 = vcmp.lt.f32.partialorder %v404_v62, 0.0  ;;  %v260_v43 = vadd.f32 1.0, %v407_v0 }
  0x32   :  { %v238_v44 = vsel %vm237_vm3, %v404_v62, 0.0  ;;  %vm263_vm5 = vcmp.gt.f32.partialorder %v407_v0, 0.0  ;;  %v209_v56 = vmul.f32 %v208_v49, %v203_v48  ;;  %v307_v58 = vadd.f32 -1.0, %v171_v41 }
  0x33   :  { %v236_v42 = vmul.f32 -0.25, %v235_v39  ;;  %v261_v50 = vmul.f32 %v260_v43, %v260_v43  ;;  %v193_v59 = vmul.f32 0.25, %v192_v51  ;;  %v264_v61 = vsel %vm263_vm5, %v407_v0, 0.0 }
  0x34   :  { %v195_v1 = vsel %vm194_vm6, %v171_v41, 0.0  ;;  %v507_v2 = vsel %vm501_vm7, %v209_v56, %v212_v60  ;;  %v198_v4 = vmul.f32 %v307_v58, %v307_v58  ;;  %v201_v7 = vsel %vm200_vm8, %v171_v41, 0.0 }
  0x35   :  { %v491_v47 = vsel %vm463_vm2, %v236_v42, %v238_v44  ;;  %v262_v57 = vmul.f32 0.25, %v261_v50  ;;  %v513_v5 = vsel %vm501_vm7, %v193_v59, %v195_v1  ;;  %vm205_vm9 = vcmp.gt.f32.partialorder %v171_v41, 1.0 }
  0x36   :  { %138 = vrot.lane.b32.xlu1 %v435_v17, %s349_s13  ;;  %103 = vrot.lane.b32.xlu2 %v439_v18, %s348_s0  ;;  %v199_v6 = vmul.f32 -0.25, %v198_v4  ;;  %v204_v9 = vmul.f32 %v203_v48, %v191_v45  ;;  %v206_v10 = vsel %vm205_vm9, %v167_v46, 0.0 }
  0x37   :  { %135 = vrot.lane.b32.xlu0 %v443_v21, %s348_s0  ;;  %v265_v3 = vsel %vm457_vm1, %v262_v57, %v264_v61 }
  0x38   :  { %v522_v8 = vsel %vm501_vm7, %v199_v6, %v201_v7  ;;  %v528_v11 = vsel %vm501_vm7, %v204_v9, %v206_v10 }
  0x3e   :  { %272 = vrot.lane.b32.xlu1 %v470_v37, %s348_s0  ;;  %106 = vrot.lane.b32.xlu2 %v474_v38, %s349_s13 }
  0x3f   :  { %243 = vrot.lane.b32.xlu0 %v478_v40, %s349_s13 }
  0x46   :  { %280 = vrot.lane.b32.xlu1 %v407_v0, %s349_s13  ;;  %240 = vrot.lane.b32.xlu2 %v491_v47, %s348_s0 }
  0x47   :  { %278 = vrot.lane.b32.xlu0 %v407_v0, %s348_s0 }
  0x4e   :  { %220 = vrot.lane.b32.xlu1 %v507_v2, %s348_s0  ;;  %275 = vrot.lane.b32.xlu2 %v265_v3, %s349_s13 }
  0x4f   :  { %217 = vrot.lane.b32.xlu0 %v513_v5, %s349_s13 }
  0x56   :  { %214 = vrot.lane.b32.xlu2 %v522_v8, %s348_s0 }
  0x5e   :  { %223 = vrot.lane.b32.xlu2 %v528_v11, %s349_s13 }
  0x7d   :  { %v532_v15 = vpop.permute.xlu1 %83 }
  0x80   :  { %v142_v12 = vpop.permute.xlu2 %141  ;;  %v78_v13 = vpop.permute.xlu0 %77 }
  0x81   :  { %v79_v63 = vadd.f32 %v78_v13, %v387_v28  ;;  %v85_v13 = vadd.f32 %v532_v15, %v381_v26 }
  0x85   :  { %v534_v20 = vpop.permute.xlu1 %86 }
  0x88   :  { %v249_v16 = vpop.permute.xlu2 %248  ;;  %v81_v19 = vpop.permute.xlu0 %80 }
  0x89   :  { %v82_v60 = vadd.f32 %v81_v19, %v375_v22 }
  0x90   :  { %v104_v23 = vpop.permute.xlu2 %103 }
  0x91   :  { %v105_v36 = vadd.f32 %v104_v23, %v474_v38 }
  0x93   :  { %vm114_vm11 = vcmp.lt.f32.partialorder %v105_v36, 0.0  ;;  %vm113_vm15 = vcmp.gt.f32.partialorder %v105_v36, 0.0 }
  0x98   :  { %v112_v24 = vpop.permute.xlu1 %111  ;;  %v107_v25 = vpop.permute.xlu2 %106 }
  0x99   :  { %v110_v27 = vpop.permute.xlu0 %109  ;;  %v108_v41 = vadd.f32 %v107_v25, %v439_v18 }
  0x9b   :  { %vm118_vm13 = vcmp.lt.f32.partialorder %v108_v41, 0.0  ;;  %vm117_vm1 = vcmp.gt.f32.partialorder %v108_v41, 0.0 }
  0xa0   :  { %v247_v29 = vpop.permute.xlu1 %246  ;;  %v241_v31 = vpop.permute.xlu2 %240 }
  0xa1   :  { %v144_v30 = vpop.permute.xlu0 %143  ;;  %v242_v45 = vadd.f32 %v241_v31, %v478_v40 }
  0xa3   :  { %vm251_vm2 = vcmp.lt.f32.partialorder %v242_v45, 0.0  ;;  %vm250_vm4 = vcmp.gt.f32.partialorder %v242_v45, 0.0 }
  0xa8   :  { %v139_v32 = vpop.permute.xlu1 %138  ;;  %v276_v34 = vpop.permute.xlu2 %275 }
  0xa9   :  { %v136_v33 = vpop.permute.xlu0 %135  ;;  %v140_v35 = vadd.f32 %v139_v32, %v443_v21  ;;  %v115_v21 = vsel %vm114_vm11, %v110_v27, 0.0  ;;  %v277_v49 = vadd.f32 %v276_v34, %v470_v37 }
  0xaa   :  { %v137_v39 = vadd.f32 %v136_v33, %v435_v17  ;;  %v119_v17 = vsel %vm118_vm13, %v112_v24, 0.0  ;;  %v116_v53 = vsel %vm113_vm15, %v393_v55, %v115_v21 }
  0xab   :  { %vm150_vm10 = vcmp.lt.f32.partialorder %v140_v35, 0.0  ;;  %vm149_vm14 = vcmp.gt.f32.partialorder %v140_v35, 0.0  ;;  %v120_v56 = vsel %vm117_vm1, %v393_v55, %v119_v17  ;;  %vm287_vm6 = vcmp.lt.f32.partialorder %v277_v49, 0.0 }
  0xac   :  { %vm146_vm12 = vcmp.lt.f32.partialorder %v137_v39, 0.0  ;;  %v151_v46 = vsel %vm150_vm10, %v144_v30, 0.0  ;;  %vm145_vm0 = vcmp.gt.f32.partialorder %v137_v39, 0.0  ;;  %vm286_vm9 = vcmp.gt.f32.partialorder %v277_v49, 0.0 }
  0xad   :  { %v147_v38 = vsel %vm146_vm12, %v142_v12, 0.0  ;;  %v152_v50 = vsel %vm149_vm14, %v391_v54, %v151_v46 }
  0xae   :  { %v148_v52 = vsel %vm145_vm0, %v391_v54, %v147_v38  ;;  %v155_v58 = vadd.f32 %v152_v50, %v120_v56 }
  0xaf   :  { %v153_v59 = vadd.f32 %v148_v52, %v116_v53 }
  0xb0   :  { %v273_v42 = vpop.permute.xlu1 %272  ;;  %v215_v44 = vpop.permute.xlu2 %214  ;;  %v156_v55 = vmul.f32 %v155_v58, %v82_v60 }
  0xb1   :  { %v244_v43 = vpop.permute.xlu0 %243  ;;  %v274_v48 = vadd.f32 %v273_v42, %v265_v3  ;;  %v154_v6 = vmul.f32 %v153_v59, %v79_v63  ;;  %v216_v9 = vadd.f32 %v215_v44, %v513_v5 }
  0xb2   :  { %v245_v18 = vadd.f32 %v244_v43, %v491_v47  ;;  %v252_v47 = vsel %vm251_vm2, %v247_v29, 0.0 }
  0xb3   :  { %vm283_vm3 = vcmp.lt.f32.partialorder %v274_v48, 0.0  ;;  %vm282_vm7 = vcmp.gt.f32.partialorder %v274_v48, 0.0  ;;  %v253_v4 = vsel %vm250_vm4, %v404_v62, %v252_v47  ;;  %v157_v24 = vsub.f32 %v154_v6, %v156_v55 }
  0xb4   :  { %vm255_vm5 = vcmp.lt.f32.partialorder %v245_v18, 0.0  ;;  %vm254_vm8 = vcmp.gt.f32.partialorder %v245_v18, 0.0 }
  0xb5   :  { %v256_v1 = vsel %vm255_vm5, %v249_v16, 0.0 }
  0xb6   :  { %v257_v12 = vsel %vm254_vm8, %v404_v62, %v256_v1 }
  0xb8   :  { %v281_v51 = vpop.permute.xlu1 %280  ;;  %v224_v54 = vpop.permute.xlu2 %223 }
  0xb9   :  { %v279_v40 = vpop.permute.xlu0 %278  ;;  %v288_v37 = vsel %vm287_vm6, %v281_v51, 0.0  ;;  %v225_v22 = vadd.f32 %v224_v54, %v507_v2 }
  0xba   :  { %v284_v57 = vsel %vm283_vm3, %v279_v40, 0.0  ;;  %v289_v3 = vsel %vm286_vm9, %v407_v0, %v288_v37 }
  0xbb   :  { %v285_v61 = vsel %vm282_vm7, %v407_v0, %v284_v57  ;;  %v88_v0 = vadd.f32 %v534_v20, %v369_v14  ;;  %v292_v16 = vadd.f32 %v289_v3, %v257_v12 }
  0xbc   :  { %v290_v7 = vadd.f32 %v285_v61, %v253_v4 }
  0xbd   :  { %v158_v29 = vsub.f32 %v85_v13, %v88_v0 }
  0xbe   :  { %v291_v25 = vmul.f32 %v290_v7, %v216_v9 }
  0xbf   :  { %v159_v30 = vadd.f32 %v158_v29, %v157_v24 }
  0xc0   :  { %v221_v10 = vpop.permute.xlu1 %220 }
  0xc1   :  { %v218_v19 = vpop.permute.xlu0 %217  ;;  %v222_v28 = vadd.f32 %v221_v10, %v528_v11 }
  0xc2   :  { %v219_v23 = vadd.f32 %v218_v19, %v522_v8 }
  0xc3   :  { %v295_v27 = vsub.f32 %v222_v28, %v225_v22 }
  0xc4   :  { %v293_v5 = vmul.f32 %v292_v16, %v219_v23 }
  0xc6   :  { %v294_v2 = vsub.f32 %v291_v25, %v293_v5 }
  0xc8   :  { %v296_v62 = vadd.f32 %v295_v27, %v294_v2 }
  0xca   :  { %v297_v31 = vadd.f32 %v296_v62, %v159_v30 }
  0xcc   :  { %298 = vst [vmem:[%s566_s1] sm:$0xff] %v297_v31 }
  0xcd   :  { %303 = vsyncpa [#allocation3], 1 }

</bundles_post_ra>
